<compile_context>
chip_gen: v7x
topology: tpu7x:2x2x1
jax: 0.10.0
libtpu: 0.0.40
codegen_flags: <defaults>
</compile_context>

<pallas_src>
import numpy as np
import jax
import jax.numpy as jnp
from jax import lax
from jax.experimental import pallas as pl
from jax.experimental.pallas import tpu as pltpu

KERNEL_SIZE = 3
LEAKY_SLOPE = 0.01          # PyTorch LeakyReLU default


# ----------------------------- Pallas kernel -------------------------------
def conv_leaky_kernel(x_ref, w_ref, b_ref, o_ref):
    # x_ref: (1, H, W*Cin)      f32  one full image, channels flattened on lanes
    # w_ref: (3*W*Cin, W*Cout)  bf16 circulant-along-W flattened conv weight
    # b_ref: (1, W*Cout)        f32  bias tiled over W
    # o_ref: (1, H, W*Cout)     f32  lane-dense output (W*Cout == 128 here)
    xi = x_ref[0]                                          # (H, W*Cin) f32
    up = jnp.concatenate([xi[-1:], xi[:-1]], axis=0)       # row h-1 (circular)
    dn = jnp.concatenate([xi[1:],  xi[:1]],  axis=0)       # row h+1 (circular)
    # One fused contraction over (kh, w_in, ci): K = 3*W*Cin (multiple of 8).
    lhs = jnp.concatenate([up, xi, dn], axis=1).astype(jnp.bfloat16)  # (H, 3*W*Cin)
    acc = jnp.dot(lhs, w_ref[...], preferred_element_type=jnp.float32)  # (H, W*Cout)
    y = acc + b_ref[...]
    y = jnp.maximum(y, LEAKY_SLOPE * y)                    # LeakyReLU
    o_ref[0] = y.astype(o_ref.dtype)


# --------------------------- one-time param prep -----------------------------
def prepare_params(w_oihw, bias, H, W):
    """Build the circulant-along-W RHS and tiled bias (done ONCE, outside jit).

    RHS[(kh, w_in, ci), (w_out, co)] = Wt[co, ci, kh, kw] where
    w_in == (w_out + kw - 1) mod W, so the whole circular 3x3 conv becomes a
    single (H, 3*W*Cin) @ (3*W*Cin, W*Cout) matmul with a lane-dense output.
    """
    w_np = np.asarray(w_oihw, np.float32)
    b_np = np.asarray(bias, np.float32)
    Cout, Cin, KH, KW = w_np.shape
    assert KH == KERNEL_SIZE and KW == KERNEL_SIZE
    pad = KW // 2
    w_t = np.transpose(w_np, (3, 2, 1, 0))                 # (KW, KH, Cin, Cout)
    rhs = np.zeros((KH, W, Cin, W, Cout), np.float32)
    for kw in range(KW):
        for w_out in range(W):
            w_in = (w_out + kw - pad) % W
            rhs[:, w_in, :, w_out, :] += w_t[kw]           # (KH, Cin, Cout)
    rhs = rhs.reshape(KH * W * Cin, W * Cout)
    b_tiled = np.tile(b_np, W)[None, :]                    # (1, W*Cout)
    return jnp.asarray(rhs, jnp.bfloat16), jnp.asarray(b_tiled, jnp.float32)


# ------------------------------- forward ------------------------------------
def simple_net_res_forward(x_nhwc, rhs, b_tiled):
    N, H, W, Cin = x_nhwc.shape
    Kdim, Ncol = rhs.shape
    Cout = Ncol // W
    x2 = x_nhwc.reshape(N, H, W * Cin)          # contiguous merge: free

    cost = pl.CostEstimate(                     # real (unpadded) work
        flops=2 * N * H * W * KERNEL_SIZE * KERNEL_SIZE * Cin * Cout,
        transcendentals=0,
        bytes_accessed=(N * H * W * Cin * 4 + Kdim * Ncol * 2
                        + Ncol * 4 + N * H * Ncol * 4),
    )

    out = pl.pallas_call(
        conv_leaky_kernel,
        out_shape=jax.ShapeDtypeStruct((N, H, Ncol), jnp.float32),
        grid=(N,),                               # one image per step, all parallel
        in_specs=[
            pl.BlockSpec((1, H, W * Cin), lambda i: (i, 0, 0)),
            pl.BlockSpec((Kdim, Ncol), lambda i: (0, 0)),     # resident weight
            pl.BlockSpec((1, Ncol), lambda i: (0, 0)),        # resident bias
        ],
        out_specs=pl.BlockSpec((1, H, Ncol), lambda i: (i, 0, 0)),
        compiler_params=pltpu.CompilerParams(
            dimension_semantics=("parallel",)),
        cost_estimate=cost,
    )(x2, rhs, b_tiled)

    return out.reshape(N, H, W, Cout)            # trailing-dim split: free


# ------------------------------- reference ----------------------------------
def simple_net_res_ref(x_nhwc, w_oihw, bias):
    p = KERNEL_SIZE // 2
    xp = jnp.pad(x_nhwc, ((0, 0), (p, p), (p, p), (0, 0)), mode="wrap")
    w_hwio = jnp.transpose(w_oihw, (2, 3, 1, 0))
    y = lax.conv_general_dilated(
        xp, w_hwio, window_strides=(1, 1), padding="VALID",
        dimension_numbers=("NHWC", "HWIO", "NHWC"))
    y = y + bias[None, None, None, :]
    return jnp.where(y >= 0.0, y, LEAKY_SLOPE * y)


# --------------------------------- main --------------------------------------
if __name__ == "__main__":
    # PyTorch-equivalent input: NCHW (2, 4, 16, 16); stored here as NHWC.
    N, H, W = 2, 16, 16
    Cin, Cout = 4, 8
    K = KERNEL_SIZE

    key = jax.random.PRNGKey(0)
    kw_, kb_, kx_ = jax.random.split(key, 3)

    w = jax.random.normal(kw_, (Cout, Cin, K, K), jnp.float32) * 0.1   # OIHW
    b = jax.random.normal(kb_, (Cout,), jnp.float32) * 0.1
    x = jax.random.normal(kx_, (N, H, W, Cin), jnp.float32)

    # Weight/bias prepared once, outside the jitted hot path.
    rhs, b_tiled = prepare_params(w, b, H, W)

    fwd = jax.jit(simple_net_res_forward)
    out = jax.block_until_ready(fwd(x, rhs, b_tiled))
    ref = jax.block_until_ready(simple_net_res_ref(x, w, b))

    assert out.shape == (N, H, W, Cout), out.shape
    assert bool(jnp.all(jnp.isfinite(out)))
    assert bool(jnp.allclose(out, ref, rtol=1e-2, atol=1e-2)), (
        float(jnp.max(jnp.abs(out - ref))))

    print("KERNEL_OK")
</pallas_src>

<mosaic_0001>
module attributes {stable_mosaic.version = 11 : i64} {
  func.func @conv_leaky_kernel(%arg0: i32, %arg1: memref<1x16x64xf32, #tpu.memory_space<vmem>>, %arg2: memref<192x128xbf16, #tpu.memory_space<vmem>>, %arg3: memref<1x128xf32, #tpu.memory_space<vmem>>, %arg4: memref<1x16x128xf32, #tpu.memory_space<vmem>>) attributes {dimension_semantics = [#tpu.dimension_semantics<parallel>], iteration_bounds = array<i64: 2>, scalar_prefetch = 0 : i64, scratch_operands = 0 : i64, tpu.core_type = #tpu.core_type<tc>, window_params = [{transform_indices = @transform_0, window_bounds = array<i64: 1, 16, 64>}, {pipeline_mode = #tpu.pipeline_mode<synchronous>, transform_indices = @transform_1, window_bounds = array<i64: 192, 128>}, {pipeline_mode = #tpu.pipeline_mode<synchronous>, transform_indices = @transform_2, window_bounds = array<i64: 1, 128>}, {transform_indices = @transform_3, window_bounds = array<i64: 1, 16, 128>}]} {
    %c0 = arith.constant 0 : index
    %c0_0 = arith.constant 0 : index
    %c0_1 = arith.constant 0 : index
    %0 = vector.load %arg1[%c0, %c0_0, %c0_1] : memref<1x16x64xf32, #tpu.memory_space<vmem>>, vector<1x16x64xf32>
    %1 = vector.shape_cast %0 : vector<1x16x64xf32> to vector<16x64xf32>
    %2 = vector.extract_strided_slice %1 {offsets = [15, 0], sizes = [1, 64], strides = [1, 1]} : vector<16x64xf32> to vector<1x64xf32>
    %3 = vector.extract_strided_slice %1 {offsets = [0, 0], sizes = [15, 64], strides = [1, 1]} : vector<16x64xf32> to vector<15x64xf32>
    %4 = tpu.concatenate %2, %3 in 0 : vector<1x64xf32>, vector<15x64xf32> -> vector<16x64xf32>
    %5 = vector.extract_strided_slice %1 {offsets = [1, 0], sizes = [15, 64], strides = [1, 1]} : vector<16x64xf32> to vector<15x64xf32>
    %6 = vector.extract_strided_slice %1 {offsets = [0, 0], sizes = [1, 64], strides = [1, 1]} : vector<16x64xf32> to vector<1x64xf32>
    %7 = tpu.concatenate %5, %6 in 0 : vector<15x64xf32>, vector<1x64xf32> -> vector<16x64xf32>
    %8 = tpu.concatenate %4, %1, %7 in 1 : vector<16x64xf32>, vector<16x64xf32>, vector<16x64xf32> -> vector<16x192xf32>
    %9 = arith.truncf %8 : vector<16x192xf32> to vector<16x192xbf16>
    %c0_2 = arith.constant 0 : index
    %c0_3 = arith.constant 0 : index
    %10 = vector.load %arg2[%c0_2, %c0_3] : memref<192x128xbf16, #tpu.memory_space<vmem>>, vector<192x128xbf16>
    %cst = arith.constant dense<0.000000e+00> : vector<16x128xf32>
    %11 = tpu.matmul %9, %10, %cst {dimension_numbers = #tpu.dot_dimension_numbers<[1], [0], [0], [1], [0, 0, 1, 1], [], []>} : vector<16x192xbf16>, vector<192x128xbf16>, vector<16x128xf32> -> vector<16x128xf32>
    %c0_4 = arith.constant 0 : index
    %c0_5 = arith.constant 0 : index
    %12 = vector.load %arg3[%c0_4, %c0_5] : memref<1x128xf32, #tpu.memory_space<vmem>>, vector<1x128xf32>
    %13 = vector.broadcast %12 : vector<1x128xf32> to vector<16x128xf32>
    %14 = arith.addf %11, %13 : vector<16x128xf32>
    %cst_6 = arith.constant 0.00999999977 : f32
    %15 = vector.broadcast %cst_6 : f32 to vector<16x128xf32>
    %16 = arith.mulf %15, %14 : vector<16x128xf32>
    %17 = arith.maximumf %14, %16 : vector<16x128xf32>
    %c0_7 = arith.constant 0 : index
    %c0_8 = arith.constant 0 : index
    %c0_9 = arith.constant 0 : index
    %18 = vector.load %arg4[%c0_7, %c0_8, %c0_9] : memref<1x16x128xf32, #tpu.memory_space<vmem>>, vector<1x16x128xf32>
    %19 = vector.shape_cast %18 : vector<1x16x128xf32> to vector<16x128xf32>
    %20 = vector.shape_cast %17 : vector<16x128xf32> to vector<1x16x128xf32>
    tpu.vector_store %arg4[%c0_7, %c0_8, %c0_9], %20 {strides = array<i32>} : memref<1x16x128xf32, #tpu.memory_space<vmem>>, vector<1x16x128xf32>,
    return
  }
  func.func @transform_0(%arg0: i32) -> (i32, i32, i32) {
    %c0_i32 = arith.constant 0 : i32
    %c0_i32_0 = arith.constant 0 : i32
    %c0_i32_1 = arith.constant 0 : i32
    return %arg0, %c0_i32, %c0_i32_0 : i32, i32, i32
  }
  func.func @transform_1(%arg0: i32) -> (i32, i32) {
    %c0_i32 = arith.constant 0 : i32
    %c0_i32_0 = arith.constant 0 : i32
    %c0_i32_1 = arith.constant 0 : i32
    return %c0_i32, %c0_i32_0 : i32, i32
  }
  func.func @transform_2(%arg0: i32) -> (i32, i32) {
    %c0_i32 = arith.constant 0 : i32
    %c0_i32_0 = arith.constant 0 : i32
    %c0_i32_1 = arith.constant 0 : i32
    return %c0_i32, %c0_i32_0 : i32, i32
  }
  func.func @transform_3(%arg0: i32) -> (i32, i32, i32) {
    %c0_i32 = arith.constant 0 : i32
    %c0_i32_0 = arith.constant 0 : i32
    %c0_i32_1 = arith.constant 0 : i32
    return %arg0, %c0_i32, %c0_i32_0 : i32, i32, i32
  }
}

</mosaic_0001>

<bundles_post_ra>
// kernel: simple_net_res_forward.1
= control target key start
LH: loop header
LB: loop body
LE: loop exit
PB: predicated region body
PF: predicated region fallthrough
CT: control target
= control target key end

     0   :  { %s495_s12 = smov 0   ;;  %s561_s0 = inlined_call_operand.vmem [shape: f32[2,16,64], index: 0, kind: input, shape index: {}]   ;;  %s562_s1 = inlined_call_operand.vmem [shape: bf16[192,128], index: 1, kind: input, shape index: {}]   ;;  %s563_s2 = inlined_call_operand.vmem [shape: f32[1,128], index: 2, kind: input, shape index: {}]   ;;  %s564_s3 = inlined_call_operand.vmem [shape: f32[2,16,128], index: 3, kind: output, shape index: {}]  }
   0x1 LB: > { %s411_s13 = sadd.s32 4294967295, %s471_s12   ;;  %p415_p0 = scmp.ge.s32.totalorder %s471_s12, 1  ;;  %s471_s12 = sphi %s495_s12, %s13_s12  }
   0x2   : > { %p137_p1 = scmp.lt.s32.totalorder %s471_s12, 3 }
   0x4   : > { %p138_p2 = pnand %p415_p0, %p137_p1 }
   0x5   : > { %p161_p3 = scmp.lt.s32.totalorder (!%p138_p2), %s411_s13, 1  ;;  %v453_v0 = vld [vmem:[%s562_s1] sm:$0xff] (!%p138_p2)   ;;  %v473_v1 = vmov (!%p138_p2), 0   ;;  %v454_v2 = vld [vmem:[%s562_s1 + $0x8] sm:$0xff] (!%p138_p2)   ;;  %v455_v5 = vld [vmem:[%s562_s1 + $0x10] sm:$0xff] (!%p138_p2)   ;;  %vm178_vm0 = vcmask (!%p138_p2), 1040384  }
   0x6   : > { %141 = sbr.rel (%p138_p2) target bundleno = 360 (0x168), region = 32  ;;  %309 = vmatprep.subr.bf16.mxu0 (!%p138_p2), %v473_v1  ;;  %vm184_vm1 = vcmask (!%p138_p2), 1046528   ;;  %s474_s24 = smov (!%p138_p2), 64   ;;  %v456_v13 = vld [vmem:[%s562_s1 + $0x18] sm:$0xff] (!%p138_p2)   ;;  %vm198_vm2 = vcmask (!%p138_p2), 523264   ;;  %v457_v17 = vld [vmem:[%s562_s1 + $0x20] sm:$0xff] (!%p138_p2)  }
   0x7   : > { %310 = vmatpush1.bf16.msra.mxu0 (!%p138_p2), %v453_v0  ;;  %v458_v18 = vld [vmem:[%s562_s1 + $0x28] sm:$0xff] (!%p138_p2)   ;;  %v459_v19 = vld [vmem:[%s562_s1 + $0x30] sm:$0xff] (!%p138_p2)   ;;  %v460_v20 = vld [vmem:[%s562_s1 + $0x38] sm:$0xff] (!%p138_p2)  }
   0x8   : > { %311 = vmatprep.subr.bf16.mxu0 (!%p138_p2), %v473_v1  ;;  %v461_v21 = vld [vmem:[%s562_s1 + $0x40] sm:$0xff] (!%p138_p2)   ;;  %v462_v22 = vld [vmem:[%s562_s1 + $0x48] sm:$0xff] (!%p138_p2)   ;;  %v463_v23 = vld [vmem:[%s562_s1 + $0x50] sm:$0xff] (!%p138_p2)  }
   0x9   : > { %v464_v24 = vld [vmem:[%s562_s1 + $0x58] sm:$0xff] (!%p138_p2)   ;;  %v420_v31 = vld [vmem:[%s563_s2] ss:$0 sm:$0xff] (!%p138_p2) }
   0xb   : > { %312 = vmatpush1.bf16.msra.mxu0 (!%p138_p2), %v454_v2 }
   0xc   : > { %313 = vmatprep.subr.bf16.mxu0 (!%p138_p2), %v473_v1 }
   0xd   : > { %s566_s13 = smov (!%p161_p3, %s411_s13), 1 }
   0xe   : > { %s436_s18 = sshll.u32 %s566_s13, 4 }
   0xf   : > { %s165_s21 = scalar_lea.vmem %s561_s0, %s436_s18  ;;  %314 = vmatpush1.bf16.msra.mxu0 %v455_v5  ;;  %s170_s23 = scalar_lea.vmem %s564_s3, %s436_s18 }
  0x10   : > { %v172_v3 = vld [vmem:[%s165_s21] sm:$0xff]  ;;  %v173_v4 = vld [vmem:[%s165_s21 + $0x8] sm:$0xff]  ;;  %315 = vmatprep.subr.bf16.mxu0 %v473_v1 }
  0x11   : > { %v175_v6 = vrot.slane %v173_v4, 7  ;;  %v186_v7 = vrot.slane %v173_v4, 1  ;;  %v448_v8 = vpack.i.bf16 %v173_v4, %v172_v3  ;;  %v179_v9 = vrot.slane %v172_v3, 7 }
  0x12   : > { %v185_v10 = vrot.slane %v172_v3, 1 }
  0x13   : > { %449 = vrot.lane.b32.xlu0 %v448_v8, %s474_s24  ;;  %v180_v11 = vsel %vm178_vm0, %v179_v9, %v175_v6  ;;  %v183_v12 = vsel %vm178_vm0, %v175_v6, %v179_v9  ;;  %316 = vmatpush1.bf16.msra.mxu0 %v456_v13 }
  0x14   : > { %v187_v14 = vsel %vm184_vm1, %v185_v10, %v186_v7  ;;  %v191_v15 = vsel %vm184_vm1, %v186_v7, %v185_v10  ;;  %317 = vmatprep.subr.bf16.mxu0 %v473_v1 }
  0x15   : > { %v202_v16 = vpack.c.bf16 %v191_v15, %v187_v14 }
  0x17   : > { %433 = vmatprep.mubr.msk.bf16.mxu0 %vm198_vm2, %v202_v16  ;;  %318 = vmatpush1.bf16.msra.mxu0 %v457_v17 }
  0x18   : > { %319 = vmatprep.subr.bf16.mxu0 %v473_v1 }
  0x1b   : > { %320 = vmatpush1.bf16.msra.mxu0 %v458_v18 }
  0x1c   : > { %321 = vmatprep.subr.bf16.mxu0 %v473_v1 }
  0x1f   : > { %322 = vmatpush1.bf16.msra.mxu0 %v459_v19 }
  0x20   : > { %323 = vmatprep.subr.bf16.mxu0 %v473_v1 }
  0x23   : > { %324 = vmatpush1.bf16.msra.mxu0 %v460_v20 }
  0x24   : > { %325 = vmatprep.subr.bf16.mxu0 %v473_v1 }
  0x27   : > { %326 = vmatpush1.bf16.msra.mxu0 %v461_v21 }
  0x28   : > { %327 = vmatprep.subr.bf16.mxu0 %v473_v1 }
  0x2b   : > { %328 = vmatpush1.bf16.msra.mxu0 %v462_v22 }
  0x2c   : > { %329 = vmatprep.subr.bf16.mxu0 %v473_v1 }
  0x2f   : > { %330 = vmatpush1.bf16.msra.mxu0 %v463_v23 }
  0x30   : > { %331 = vmatprep.subr.bf16.mxu0 %v473_v1 }
  0x33   : > { %332 = vmatpush1.bf16.msra.mxu0 %v464_v24 }
  0x85   : > { %v450_v25 = vpop.permute.xlu0 %449 }
  0x86   : > { %v452_v26 = vunpack.i.h.bf16 %v450_v25  ;;  %v451_v27 = vunpack.i.l.bf16 %v450_v25 }
  0x88   : > { %v199_v28 = vsel %vm198_vm2, %v183_v12, %v451_v27  ;;  %v200_v29 = vsel %vm198_vm2, %v180_v11, %v452_v26 }
  0x89   : > { %v201_v30 = vpack.c.bf16 %v200_v29, %v199_v28 }
  0x8b   : > { %342 = vmatmul.mubr.bf16.vlgmr.msra.gmra.mrb[0].mxu0 %v201_v30 }
 0x15e   : > { %v343_v32 = vpop.f32.mrb[0].mxu0 }
 0x15f   : > { %v344_v33 = vadd.f32 %v420_v31, %v343_v32  ;;  %v345_v34 = vpop.f32.mrb[1].mxu0 }
 0x160   : > { %v346_v35 = vpop.f32.mrb[2].mxu0 }
 0x161   : > { %v350_v36 = vmul.f32 0.01, %v344_v33  ;;  %v347_v37 = vadd.f32 %v420_v31, %v346_v35  ;;  %v348_v38 = vpop.f32.mrb[3].mxu0 }
 0x163   : > { %v352_v39 = vmax.f32 %v344_v33, %v350_v36  ;;  %v351_v40 = vmul.f32 0.01, %v347_v37 }
 0x165   : > { %354 = vst [vmem:[%s170_s23] sm:$0xff] %v352_v39  ;;  %v353_v41 = vmax.f32 %v347_v37, %v351_v40 }
 0x167   : > { %355 = vst [vmem:[%s170_s23 + $0x8] sm:$0xff] %v353_v41 }
 0x168 PF: > { %s13_s12 = sadd.s32 1, %s471_s12  }
 0x169   : > { %p10_p4 = scmp.ge.s32.totalorder %s13_s12, 4  }
 0x16b   :  { %12 = sbr.rel (!%p10_p4) target bundleno = 1 (0x1), region = 62 }

</bundles_post_ra>
